<compile_context>
chip_gen: v6e
topology: v6e:2x2x1
jax: 0.10.0
libtpu: 0.0.40
codegen_flags: <defaults>
</compile_context>

<pallas_src>
import numpy as np
import jax
import jax.numpy as jnp
from jax import lax
from jax.experimental import pallas as pl
from jax.experimental.pallas import tpu as pltpu


def _cdiv(a, b):
    return -(-a // b)


def make_kernel(k):
    """numpy port of the PyTorch make_kernel (outer product of 1-D tap, normalized)."""
    k = np.asarray(k, dtype=np.float64)
    if k.ndim == 1:
        k = np.outer(k, k)
    k = k / k.sum()
    return k


def _build_polyphase_dy(k_np, up, pad0, W):
    """One constant matrix G_dy of shape (W, up*up*W) per distinct row offset dy.

    For output row (u*ty + ry) and column (u*tx + rx):
        out[ty, ry*uW + u*tx + rx] = sum_dy  x[ty + dy, :] @ G_dy[:, ry*uW + u*tx + rx]
    with x treated as zero outside [0, H) along rows.  The W-direction zero-upsample,
    the W FIR taps and BOTH the column-phase and row-phase interleaves are folded into
    the constant matrices, so the kernel writes one lane-dense (H, up*up*W) slab whose
    row-major layout is exactly (up*H, up*W).
    """
    kh, kw = k_np.shape
    kflip = k_np[::-1, ::-1]
    u = int(up)
    uW = u * W
    uuW = u * uW

    dy_set = set()
    for ry in range(u):
        for a in range(kh):
            if (ry + a - pad0) % u == 0:
                dy_set.add((ry + a - pad0) // u)
    dys = sorted(dy_set)

    mats = []
    for dy in dys:
        G = np.zeros((W, uuW), dtype=np.float64)
        for ry in range(u):
            a = pad0 - ry + u * dy          # unique H-tap for this (ry, dy)
            if not (0 <= a < kh):
                continue
            for rx in range(u):
                for tx in range(W):
                    col = ry * uW + u * tx + rx
                    for s in range(W):
                        b = pad0 - rx + u * (s - tx)
                        if 0 <= b < kw:
                            G[s, col] = kflip[a, b]
        mats.append(G)
    if not mats:
        dys = [0]
        mats = [np.zeros((W, uuW), dtype=np.float64)]
    return np.stack(mats, axis=0).astype(np.float32), dys


def _device_block_policy():
    """(block_target_bytes, vmem_limit_bytes, want_even_grid_steps) per TPU generation."""
    try:
        kind = jax.devices()[0].device_kind.lower()
    except Exception:
        kind = ""
    if ("v5" in kind) or ("v6" in kind):
        # 128 MiB physical VMEM: large blocks, raised scoped-VMEM limit.
        return 12 << 20, 64 << 20, False
    # v7x (64 MiB VMEM / TC, 2 TensorCores) and unknown chips: conservative blocks,
    # keep the grid-step count even so both cores get balanced work.
    return 6 << 20, 32 << 20, True


def _pick_block_c(nc, plane_bytes, target_bytes, want_even_steps):
    """Pick channel-block size Bc and (possibly padded) channel count."""
    cap = max(1, min(nc, int(target_bytes // max(1, plane_bytes))))
    divs = [d for d in range(1, nc + 1) if nc % d == 0 and d <= cap]
    bc = max(divs)
    if want_even_steps:
        even = [d for d in divs if (nc // d) % 2 == 0]
        # Only rebalance for megacore if it does not shrink the block by more than 2x.
        if even and max(even) * 2 >= bc:
            bc = max(even)
    nc_pad = nc
    if bc * 4 <= cap:
        # Degenerate factorization (e.g. prime N*C): cdiv blocking + zero-plane pad.
        steps = _cdiv(nc, cap)
        if want_even_steps and steps > 1 and steps % 2 == 1:
            steps += 1
        bc = _cdiv(nc, steps)
        nc_pad = steps * bc
    return bc, nc_pad


def _make_fir_kernel(H, W, up, dys, pad_lo_a, Hp_alloc, bc):
    uuW = up * up * W
    need_halo = Hp_alloc > H

    def kernel(g_ref, x_ref, o_ref, xpad_ref):
        # g_ref:    (ndys, W, up*up*W) bf16 polyphase matrices (grid-invariant -> resident)
        # x_ref:    (bc, H, W)         input planes for this grid step
        # o_ref:    (bc, H, up*up*W)   row-major identical to (bc, up*H, up*W)
        # xpad_ref: (bc, Hp_alloc, W)  bf16 scratch; zero halo along H built in VMEM
        if need_halo:
            xpad_ref[...] = jnp.zeros(xpad_ref.shape, xpad_ref.dtype)
        # Tile-aligned interior store (pad_lo_a is a multiple of 16).
        xpad_ref[:, pad_lo_a:pad_lo_a + H, :] = x_ref[...].astype(jnp.bfloat16)

        acc = jnp.zeros((bc * H, uuW), jnp.float32)
        for d, dy in enumerate(dys):
            if abs(dy) >= H:
                continue
            xs = xpad_ref[:, pad_lo_a + dy:pad_lo_a + dy + H, :]
            acc = acc + jnp.dot(xs.reshape(bc * H, W), g_ref[d],
                                preferred_element_type=jnp.float32)
        # Single lane-dense store of the whole output block.
        o_ref[...] = acc.reshape(bc, H, uuW).astype(o_ref.dtype)

    return kernel


def upfirdn2d_upsample(x, k_np, factor, pad0):
    """upfirdn2d(x, k, up=factor, down=1, pad=(pad0, pad1)) for this module's config."""
    N, C, H, W = x.shape
    NC = N * C
    u = int(factor)
    uuW = u * u * W

    g_np, dys = _build_polyphase_dy(k_np, u, pad0, W)
    ndys = g_np.shape[0]
    pad_lo = max(0, -min(dys))
    pad_hi = max(0, max(dys))
    # Interior offset rounded to a packed-sublane boundary (bf16 packs 16 rows/tile)
    # so the in-kernel scratch store is tile-aligned; reads tolerate unaligned offsets.
    pad_lo_a = 0 if pad_lo == 0 else _cdiv(pad_lo, 16) * 16
    Hp_alloc = pad_lo_a + H + pad_hi

    target_bytes, vmem_limit, want_even = _device_block_policy()
    itemsize = jnp.dtype(x.dtype).itemsize
    plane_bytes = (H * W + H * uuW) * itemsize + Hp_alloc * W * 2
    bc, nc_pad = _pick_block_c(NC, plane_bytes, target_bytes, want_even)

    # TODO(synk): add an H-tiling grid axis (with halo handling) as a fallback for very
    # large planes where even a single-plane (bc=1) block would exceed the VMEM budget.

    x3 = x.reshape(NC, H, W)                       # free reshape (contiguous)
    if nc_pad != NC:
        # Degenerate-NC path only: pad with zero planes; sliced off below.
        x3 = jnp.pad(x3, ((0, nc_pad - NC), (0, 0), (0, 0)))

    g = jnp.asarray(g_np, dtype=jnp.bfloat16)      # tiny constant, stays resident

    kernel_fn = _make_fir_kernel(H, W, u, dys, pad_lo_a, Hp_alloc, bc)

    out = pl.pallas_call(
        kernel_fn,
        out_shape=jax.ShapeDtypeStruct((nc_pad, H, uuW), x.dtype),
        grid=(nc_pad // bc,),
        in_specs=[
            pl.BlockSpec((ndys, W, uuW), lambda i: (0, 0, 0)),   # constant -> resident
            pl.BlockSpec((bc, H, W), lambda i: (i, 0, 0)),
        ],
        out_specs=pl.BlockSpec((bc, H, uuW), lambda i: (i, 0, 0)),
        scratch_shapes=[pltpu.VMEM((bc, Hp_alloc, W), jnp.bfloat16)],
        compiler_params=pltpu.CompilerParams(
            dimension_semantics=("parallel",),
            vmem_limit_bytes=vmem_limit,
        ),
    )(g, x3)

    if nc_pad != NC:
        out = out[:NC]
    # (NC, H, u*u*W) has identical row-major layout to (N, C, u*H, u*W): free reshape.
    return out.reshape(N, C, u * H, u * W)


class Upsample:
    """Pallas/JAX equivalent of the PyTorch Upsample module."""

    def __init__(self, kernel, factor=2):
        self.factor = int(factor)
        k = make_kernel(kernel) * (self.factor ** 2)
        self._kernel_np = k
        self.kernel = jnp.asarray(k, dtype=jnp.float32)   # registered-buffer equivalent
        p = k.shape[0] - self.factor
        pad0 = (p + 1) // 2 + self.factor - 1
        pad1 = p // 2
        self.pad = (pad0, pad1)

    def __call__(self, x):
        return upfirdn2d_upsample(x, self._kernel_np, self.factor, self.pad[0])


def _reference(x, kernel, factor):
    """Pure-JAX reference (mirrors upfirdn2d_native) for validation."""
    N, C, H, W = x.shape
    k = make_kernel(kernel) * (factor ** 2)
    kh, kw = k.shape
    p = kh - factor
    pad0 = (p + 1) // 2 + factor - 1
    pad1 = p // 2
    up = factor

    xr = x.reshape(N, C, H, 1, W, 1)
    xr = jnp.pad(xr, ((0, 0), (0, 0), (0, 0), (0, up - 1), (0, 0), (0, up - 1)))
    xu = xr.reshape(N, C, H * up, W * up)
    xp = jnp.pad(xu, ((0, 0), (0, 0), (pad0, pad1), (pad0, pad1)))

    kflip = jnp.asarray(np.ascontiguousarray(k[::-1, ::-1]), dtype=jnp.float32)
    xp_flat = xp.reshape(N * C, 1, xp.shape[2], xp.shape[3])
    out = lax.conv_general_dilated(
        xp_flat, kflip[None, None, :, :],
        window_strides=(1, 1), padding="VALID",
        dimension_numbers=("NCHW", "OIHW", "NCHW"),
        precision=lax.Precision.HIGHEST)
    return out.reshape(N, C, out.shape[2], out.shape[3])


if __name__ == "__main__":
    key = jax.random.PRNGKey(0)
    N, C, H, W = 2, 4, 16, 16
    x = jax.random.normal(key, (N, C, H, W), dtype=jnp.float32)

    # Canonical StyleGAN2 blur kernel [1, 3, 3, 1], factor=2.
    module = Upsample(kernel=[1, 3, 3, 1], factor=2)

    out = jax.block_until_ready(module(x))
    ref = jax.block_until_ready(_reference(x, [1, 3, 3, 1], 2))

    assert out.shape == (N, C, 2 * H, 2 * W), out.shape
    assert out.dtype == jnp.float32
    # Tolerance budgets for the bf16 MXU inputs (f32 accumulation); any phase/offset
    # bug would produce O(1) errors and still fail.
    np.testing.assert_allclose(np.asarray(out), np.asarray(ref), rtol=2e-2, atol=2e-2)

    print("KERNEL_OK")
</pallas_src>

<mosaic_0001>
module attributes {stable_mosaic.version = 11 : i64} {
  func.func @kernel(%arg0: i32, %arg1: memref<3x16x64xbf16, #tpu.memory_space<vmem>>, %arg2: memref<4x16x16xf32, #tpu.memory_space<vmem>>, %arg3: memref<4x16x64xf32, #tpu.memory_space<vmem>>, %arg4: memref<4x33x16xbf16, #tpu.memory_space<vmem>>) attributes {dimension_semantics = [#tpu.dimension_semantics<parallel>], iteration_bounds = array<i64: 2>, scalar_prefetch = 0 : i64, scratch_operands = 1 : i64, tpu.core_type = #tpu.core_type<tc>, window_params = [{pipeline_mode = #tpu.pipeline_mode<synchronous>, transform_indices = @transform_0, window_bounds = array<i64: 3, 16, 64>}, {transform_indices = @transform_1, window_bounds = array<i64: 4, 16, 16>}, {transform_indices = @transform_2, window_bounds = array<i64: 4, 16, 64>}]} {
    %cst = arith.constant 0.000000e+00 : bf16
    %0 = vector.broadcast %cst : bf16 to vector<4x33x16xbf16>
    %c0 = arith.constant 0 : index
    %c0_0 = arith.constant 0 : index
    %c0_1 = arith.constant 0 : index
    %1 = vector.load %arg4[%c0, %c0_0, %c0_1] : memref<4x33x16xbf16, #tpu.memory_space<vmem>>, vector<4x33x16xbf16>
    tpu.vector_store %arg4[%c0, %c0_0, %c0_1], %0 {strides = array<i32>} : memref<4x33x16xbf16, #tpu.memory_space<vmem>>, vector<4x33x16xbf16>,
    %c0_2 = arith.constant 0 : index
    %c0_3 = arith.constant 0 : index
    %c0_4 = arith.constant 0 : index
    %2 = vector.load %arg2[%c0_2, %c0_3, %c0_4] : memref<4x16x16xf32, #tpu.memory_space<vmem>>, vector<4x16x16xf32>
    %3 = arith.truncf %2 : vector<4x16x16xf32> to vector<4x16x16xbf16>
    %c0_5 = arith.constant 0 : index
    %c16 = arith.constant 16 : index
    %c0_6 = arith.constant 0 : index
    %4 = vector.load %arg4[%c0_5, %c16, %c0_6] : memref<4x33x16xbf16, #tpu.memory_space<vmem>>, vector<4x16x16xbf16>
    tpu.vector_store %arg4[%c0_5, %c16, %c0_6], %3 {strides = array<i32>} : memref<4x33x16xbf16, #tpu.memory_space<vmem>>, vector<4x16x16xbf16>,
    %cst_7 = arith.constant 0.000000e+00 : f32
    %5 = vector.broadcast %cst_7 : f32 to vector<64x64xf32>
    %c0_8 = arith.constant 0 : index
    %c15 = arith.constant 15 : index
    %c0_9 = arith.constant 0 : index
    %6 = vector.load %arg4[%c0_8, %c15, %c0_9] : memref<4x33x16xbf16, #tpu.memory_space<vmem>>, vector<4x16x16xbf16>
    %7 = vector.shape_cast %6 : vector<4x16x16xbf16> to vector<64x16xbf16>
    %c0_10 = arith.constant 0 : index
    %c0_11 = arith.constant 0 : index
    %c0_12 = arith.constant 0 : index
    %8 = vector.load %arg1[%c0_10, %c0_11, %c0_12] : memref<3x16x64xbf16, #tpu.memory_space<vmem>>, vector<1x16x64xbf16>
    %9 = vector.shape_cast %8 : vector<1x16x64xbf16> to vector<16x64xbf16>
    %cst_13 = arith.constant dense<0.000000e+00> : vector<64x64xf32>
    %10 = tpu.matmul %7, %9, %cst_13 {dimension_numbers = #tpu.dot_dimension_numbers<[1], [0], [0], [1], [0, 0, 1, 1], [], []>} : vector<64x16xbf16>, vector<16x64xbf16>, vector<64x64xf32> -> vector<64x64xf32>
    %11 = arith.addf %5, %10 : vector<64x64xf32>
    %c0_14 = arith.constant 0 : index
    %c16_15 = arith.constant 16 : index
    %c0_16 = arith.constant 0 : index
    %12 = vector.load %arg4[%c0_14, %c16_15, %c0_16] : memref<4x33x16xbf16, #tpu.memory_space<vmem>>, vector<4x16x16xbf16>
    %13 = vector.shape_cast %12 : vector<4x16x16xbf16> to vector<64x16xbf16>
    %c1 = arith.constant 1 : index
    %c0_17 = arith.constant 0 : index
    %c0_18 = arith.constant 0 : index
    %14 = vector.load %arg1[%c1, %c0_17, %c0_18] : memref<3x16x64xbf16, #tpu.memory_space<vmem>>, vector<1x16x64xbf16>
    %15 = vector.shape_cast %14 : vector<1x16x64xbf16> to vector<16x64xbf16>
    %cst_19 = arith.constant dense<0.000000e+00> : vector<64x64xf32>
    %16 = tpu.matmul %13, %15, %cst_19 {dimension_numbers = #tpu.dot_dimension_numbers<[1], [0], [0], [1], [0, 0, 1, 1], [], []>} : vector<64x16xbf16>, vector<16x64xbf16>, vector<64x64xf32> -> vector<64x64xf32>
    %17 = arith.addf %11, %16 : vector<64x64xf32>
    %c0_20 = arith.constant 0 : index
    %c17 = arith.constant 17 : index
    %c0_21 = arith.constant 0 : index
    %18 = vector.load %arg4[%c0_20, %c17, %c0_21] : memref<4x33x16xbf16, #tpu.memory_space<vmem>>, vector<4x16x16xbf16>
    %19 = vector.shape_cast %18 : vector<4x16x16xbf16> to vector<64x16xbf16>
    %c2 = arith.constant 2 : index
    %c0_22 = arith.constant 0 : index
    %c0_23 = arith.constant 0 : index
    %20 = vector.load %arg1[%c2, %c0_22, %c0_23] : memref<3x16x64xbf16, #tpu.memory_space<vmem>>, vector<1x16x64xbf16>
    %21 = vector.shape_cast %20 : vector<1x16x64xbf16> to vector<16x64xbf16>
    %cst_24 = arith.constant dense<0.000000e+00> : vector<64x64xf32>
    %22 = tpu.matmul %19, %21, %cst_24 {dimension_numbers = #tpu.dot_dimension_numbers<[1], [0], [0], [1], [0, 0, 1, 1], [], []>} : vector<64x16xbf16>, vector<16x64xbf16>, vector<64x64xf32> -> vector<64x64xf32>
    %23 = arith.addf %17, %22 : vector<64x64xf32>
    %24 = vector.shape_cast %23 : vector<64x64xf32> to vector<4x16x64xf32>
    %c0_25 = arith.constant 0 : index
    %c0_26 = arith.constant 0 : index
    %c0_27 = arith.constant 0 : index
    %25 = vector.load %arg3[%c0_25, %c0_26, %c0_27] : memref<4x16x64xf32, #tpu.memory_space<vmem>>, vector<4x16x64xf32>
    tpu.vector_store %arg3[%c0_25, %c0_26, %c0_27], %24 {strides = array<i32>} : memref<4x16x64xf32, #tpu.memory_space<vmem>>, vector<4x16x64xf32>,
    return
  }
  func.func @transform_0(%arg0: i32) -> (i32, i32, i32) {
    %c0_i32 = arith.constant 0 : i32
    %c0_i32_0 = arith.constant 0 : i32
    %c0_i32_1 = arith.constant 0 : i32
    %c0_i32_2 = arith.constant 0 : i32
    return %c0_i32, %c0_i32_0, %c0_i32_1 : i32, i32, i32
  }
  func.func @transform_1(%arg0: i32) -> (i32, i32, i32) {
    %c0_i32 = arith.constant 0 : i32
    %c0_i32_0 = arith.constant 0 : i32
    %c0_i32_1 = arith.constant 0 : i32
    return %arg0, %c0_i32, %c0_i32_0 : i32, i32, i32
  }
  func.func @transform_2(%arg0: i32) -> (i32, i32, i32) {
    %c0_i32 = arith.constant 0 : i32
    %c0_i32_0 = arith.constant 0 : i32
    %c0_i32_1 = arith.constant 0 : i32
    return %arg0, %c0_i32, %c0_i32_0 : i32, i32, i32
  }
}

</mosaic_0001>

<bundles_post_ra>
// kernel: tpu_custom_call.1
= control target key start
LH: loop header
LB: loop body
LE: loop exit
PB: predicated region body
PF: predicated region fallthrough
CT: control target
= control target key end

     0   :  { %7 = vsyncpa [#allocation4], 0  ;;  %s1575_s0 = inlined_call_operand.hbm [shape: bf16[3,16,64], index: 0, kind: input, shape index: {}]   ;;  %s1576_s1 = inlined_call_operand.hbm [shape: f32[8,16,16], index: 1, kind: input, shape index: {}]   ;;  %s1577_s2 = inlined_call_operand.hbm [shape: f32[8,16,64], index: 2, kind: output, shape index: {}]  }
   0x1   :  { %8 = vsyncpa [#allocation7], 0 }
   0x2   :  { %10 = vsyncpa [#allocation7 + $0x1], 0 }
   0x3   :  { %11 = vsyncpa [#allocation5], 0 }
   0x4   :  { %13 = vsyncpa [#allocation5 + $0x1], 0  ;;  %s1229_s9 = smov 0   ;;  %s1231_s10 = smov 0  }
   0x5   :  { %s1233_s11 = smov 0   ;;  %s1235_s12 = smov 0  }
   0x6 LB: > { %s1250_s13 = sadd.s32 4294967295, %s1202_s12   ;;  %s893_s14 = sadd.s32 4294967294, %s1202_s12   ;;  %s1202_s12 = sphi %s1235_s12, %s1605_s12   ;;  %s1198_s11 = sphi %s1233_s11, %s1604_s11   ;;  %s1194_s10 = sphi %s1231_s10, %s1603_s10   ;;  %s1190_s9 = sphi %s1229_s9, %s1602_s9  }
   0x7   : > { %p60_p0 = scmp.ne.s32.totalorder %s1194_s10, %s1190_s9  ;;  %p1578_p1 = scmp.eq.s32.totalorder %s1250_s13, 0 }
   0x8   : > { %p90_p3 = scmp.eq.s32.totalorder %s893_s14, 1  ;;  %p894_p5 = scmp.ge.s32.totalorder %s1202_s12, 1 }
   0x9   : > { %p1259_p4 = por %p1578_p1, %p60_p0  ;;  %p97_p7 = scmp.lt.s32.totalorder %s1202_s12, 3 }
   0xa   : > { %p1264_p6 = por %p90_p3, %p60_p0  ;;  %s1204_s18 = smov [#allocation3]  }
   0xb   : > { %s1582_s15 = scalar_select %p1259_p4, 1, 0 }
   0xc   : > { %s1583_s16 = scalar_select %p1264_p6, 1, 0 }
   0xd   : > { %p1269_p8 = pnand %p894_p5, %p97_p7  ;;  %s109_s19 = sshll.u32 %s1204_s18, 4  ;;  %s110_s19 = int_to_ptr.vmem [resolvable:$true] %s109_s19 }
   0xe   : > { %s1283_s21 = sadd.s32 1, %s1202_s12   ;;  %s47_s22 = sadd.s32 1, %s1198_s11 }
   0xf   : > { %s1584_s17 = scalar_select %p1269_p8, 1, 0 }
  0x10   : > { %p1017_p9 = pneg %p1269_p8  ;;  %s44_s23 = ssub.s32 %s1202_s12, %s1283_s21 }
  0x11   : > { %s1091_s24 = scalar_lea.vmem %s110_s19, 384  ;;  %p1099_p5 = scmp.lt.s32.totalorder %s110_s19, %s110_s19 }
  0x12   : > { %p1278_p11 = pnand %p1017_p9, %p1578_p1  ;;  %p1092_p13 = scmp.ne.s32.totalorder %s110_s19, %s1091_s24 }
  0x13   : > { %p1100_p7 = scmp.lt.s32.totalorder %s1091_s24, %s1091_s24 }
  0x14   : > { %p1082_p12 = pneg %p1278_p11 }
  0x15   : > { %p1101_p10 = por %p1100_p7, %p1099_p5 }
  0x16   : > { %p1094_p0 = pnand %p1092_p13, %p1082_p12 }
  0x18   : > { %p1095_p3 = pneg %p1094_p0 }
  0x1a   : > { %p1102_p2 = pnand %p1101_p10, %p1095_p3 }
  0x1c   : > { %1105 = shalt.err (!%p1102_p2)
}
  0x1d   : > { %s1205_s25 = smov 64   ;;  %s1206_s26 = smov 4  }
  0x1e   : > { %1020 = dma.hbm_to_vmem [thread:$0]  (!%p1278_p11), %s1575_s0, 384, %s110_s19, [#allocation4], %s1205_s25, %s1205_s25, %s1206_s26  }
  0x1f   : > { %p45_p9 = scmp.eq.s32.totalorder %s44_s23, 0  ;;  %p54_p12 = scmp.ne.s32.totalorder %s1198_s11, %s1194_s10 }
  0x20   : > { %p55_p10 = scmp.eq.s32.totalorder %s1202_s12, 0  ;;  %p1030_p2 = scmp.lt.s32.totalorder %s1202_s12, 2 }
  0x21   : > { %s1300_s29 = scalar_select %p45_p9, %s1198_s11, %s47_s22  }
  0x22   : > { %p56_p13 = por %p55_p10, %p54_p12  ;;  %p1586_p0 = scmp.eq.s32.totalorder %s1250_s13, 1 }
  0x23   : > { %s123_s3 = sand.u32 1, %s1198_s11   ;;  %s951_s4 = sshll.u32 %s1202_s12, 10 }
  0x24   : > { %p1304_p3 = por %p1586_p0, %p54_p12  ;;  %s897_s5 = sshll.u32 %s123_s3, 6 }
  0x25   : > { %s1313_s8 = scalar_lea.hbm %s1576_s1, %s951_s4  ;;  %s127_s14 = scalar_lea.vmem [#allocation6], %s897_s5 }
  0x26   : > { %s1587_s30 = scalar_select %p1304_p3, 1, 0 }
  0x27   : > { %s135_s18 = sshll.u32 %s127_s14, 4  ;;  %p1315_p11 = pnand %p1030_p2, %p56_p13  ;;  %s1319_s18 = int_to_ptr.vmem [resolvable:$true] %s135_s18 }
  0x28   : > { %s1321_s20 = scalar_lea.sflag [#allocation7], %s123_s3  ;;  %s1106_s22 = scalar_lea.hbm %s1313_s8, 1024 }
  0x29   : > { %p1107_p5 = scmp.ne.s32.totalorder %s1313_s8, %s1106_s22  ;;  %p1108_p7 = pneg %p1315_p11 }
  0x2a   : > { %s1111_s25 = scalar_lea.hbm %s1576_s1, 2048  ;;  %p1112_p10 = scmp.lt.s32.totalorder %s1313_s8, %s1576_s1 }
  0x2b   : > { %p1109_p9 = pnand %p1108_p7, %p1107_p5  ;;  %p1113_p2 = scmp.lt.s32.totalorder %s1111_s25, %s1106_s22 }
  0x2d   : > { %p1110_p12 = pneg %p1109_p9  ;;  %p1114_p13 = por %p1113_p2, %p1112_p10 }
  0x2f   : > { %p1115_p0 = pnand %p1114_p13, %p1110_p12 }
  0x31   : > { %1118 = shalt.err (!%p1115_p0)
}
  0x32   : > { %s1119_s28 = scalar_lea.vmem %s1319_s18, 1024  ;;  %s1207_s3 = smov [#allocation6]  }
  0x33   : > { %p1120_p1 = scmp.ne.s32.totalorder %s1319_s18, %s1119_s28  ;;  %s1124_s4 = sshll.u32 %s1207_s3, 4  ;;  %s1125_s4 = int_to_ptr.vmem [resolvable:$false] %s1124_s4 }
  0x34   : > { %s1126_s5 = scalar_lea.vmem %s1125_s4, 2048  ;;  %p1127_p9 = scmp.lt.s32.totalorder %s1319_s18, %s1125_s4 }
  0x35   : > { %p1122_p6 = pnand %p1120_p1, %p1108_p7  ;;  %p1128_p3 = scmp.lt.s32.totalorder %s1126_s5, %s1119_s28 }
  0x37   : > { %p1123_p5 = pneg %p1122_p6  ;;  %p1129_p4 = por %p1128_p3, %p1127_p9 }
  0x39   : > { %p1130_p8 = pnand %p1129_p4, %p1123_p5 }
  0x3b   : > { %1133 = shalt.err (!%p1130_p8)
}
  0x3c   : > { %s1208_s6 = smov 128   ;;  %s1209_s7 = smov 8  }
  0x3d   : > { %1024 = dma.hbm_to_vmem [thread:$0]  (!%p1315_p11), %s1313_s8, 1024, %s1319_s18, %s1321_s20, %s1208_s6, %s1208_s6, %s1209_s7  }
  0x3e   : > { %p1589_p1 = scmp.ne.s32.totalorder %s1584_s17, 0 }
  0x3f   : > { %p1590_p6 = scmp.eq.s32.totalorder (!%p1589_p1), %s1250_s13, 0 }
  0x40   : > { %147 = sbr.rel (%p1589_p1) target bundleno = 342 (0x156), region = 28 }
  0x45   : > { %1177 = dma.done.wait (%p1590_p6), [#allocation4], 384   ;;  %p1591_p7 = pmov %p1590_p6 }
  0x46   : > { %s1349_s14 = sand.u32 1, %s1194_s10   ;;  %p1592_p4 = scmp.ne.s32.totalorder %s1582_s15, 0 }
  0x47   : > { %1179 = vsyncadd (%p1591_p7), [#allocation4], 4294966912  ;;  %s903_s22 = sshll.u32 %s1349_s14, 6  ;;  %s154_s23 = scalar_lea.sflag [#allocation7], %s1349_s14 }
  0x48   : > { %s1355_s8 = scalar_lea.vmem [#allocation6], %s903_s22 }
  0x49   : > { %1181 = dma.done.wait (%p1592_p4), %s154_s23, 1024  }
  0x4a   : > { %1183 = vsyncadd (%p1592_p4), %s154_s23, 4294966272  ;;  %vm181_vm0 = vcmask 125952   ;;  %v1210_v0 = vmov 0   ;;  %vm186_vm1 = vcmask 122880   ;;  %vm187_vm2 = vsmask.f32 256 }
  0x4b   : > { %184 = vst.msk [vmem:[#allocation2 + $0x8] sm:$0xf] %vm181_vm0, %v1210_v0  ;;  %185 = vst.msk [vmem:[#allocation2 + $0xc] sm:$0xf] %vm181_vm0, %v1210_v0  ;;  %v1073_v2 = vld [vmem:[#allocation3 + $0x8] sm:$0xff]   ;;  %v213_v3 = vld [vmem:[%s1355_s8] sm:$0xff] }
  0x4c   : > { %183 = vst.msk [vmem:[#allocation2 + $0x4] sm:$0xf] %vm181_vm0, %v1210_v0  ;;  %193 = vst.msk [vmem:[#allocation2 + $0x18] sm:$0xf] %vm181_vm0, %v1210_v0  ;;  %v214_v4 = vld [vmem:[%s1355_s8 + $0x8] sm:$0xff]  ;;  %v217_v5 = vld [vmem:[%s1355_s8 + $0x20] sm:$0xff]  ;;  %1007 = vmatprep.subr.bf16.mxu1 %v1073_v2  ;;  %977 = vmatprep.subr.bf16.mxu0 %v1073_v2  ;;  %v952_v6 = vpack.c.bf16 %v213_v3, %v213_v3 }
  0x4d   : > { %194 = vst.msk [vmem:[#allocation2 + $0x1c] sm:$0xf] %vm181_vm0, %v1210_v0  ;;  %195 = vst.msk [vmem:[#allocation2 + $0x20] sm:$0xf] %vm181_vm0, %v1210_v0  ;;  %v953_v7 = vpack.c.bf16 %v214_v4, %v214_v4  ;;  %v218_v8 = vld [vmem:[%s1355_s8 + $0x28] sm:$0xff]  ;;  %v956_v9 = vpack.c.bf16 %v217_v5, %v217_v5  ;;  %1008 = vmatpush3.bf16.msra.mxu1 %v1073_v2  ;;  %978 = vmatpush3.bf16.msra.mxu0 %v1073_v2  ;;  %v215_v12 = vld [vmem:[%s1355_s8 + $0x10] sm:$0xff] }
  0x4e   : > { %200 = vst.msk [vmem:[#allocation2 + $0x2c] sm:$0xf] %vm181_vm0, %v1210_v0  ;;  %201 = vst.msk [vmem:[#allocation2 + $0x30] sm:$0xf] %vm181_vm0, %v1210_v0  ;;  %v957_v10 = vpack.c.bf16 %v218_v8, %v218_v8  ;;  %v1382_v11 = vld [vmem:[#allocation3] sm:$0xff]   ;;  %v216_v13 = vld [vmem:[%s1355_s8 + $0x18] sm:$0xff]  ;;  %v954_v14 = vpack.c.bf16 %v215_v12, %v215_v12 }
  0x4f   : > { %202 = vst.msk [vmem:[#allocation2 + $0x34] sm:$0xf] %vm181_vm0, %v1210_v0  ;;  %207 = vst.msk [vmem:[#allocation2 + $0x40] sm:$0xf] %vm181_vm0, %v1210_v0  ;;  %v955_v15 = vpack.c.bf16 %v216_v13, %v216_v13  ;;  %v219_v16 = vld [vmem:[%s1355_s8 + $0x30] sm:$0xff]  ;;  %v220_v17 = vld [vmem:[%s1355_s8 + $0x38] sm:$0xff]  ;;  %987 = vmatprep.subr.bf16.mxu1 %v1382_v11 }
  0x50   : > { %208 = vst.msk [vmem:[#allocation2 + $0x44] sm:$0xf] %vm181_vm0, %v1210_v0  ;;  %209 = vst.msk [vmem:[#allocation2 + $0x48] sm:$0xf] %vm181_vm0, %v1210_v0  ;;  %v958_v18 = vpack.c.bf16 %v219_v16, %v219_v16  ;;  %v959_v19 = vpack.c.bf16 %v220_v17, %v220_v17  ;;  %v1393_v20 = vld [vmem:[#allocation3 + $0x10] sm:$0xff]   ;;  %vm394_vm4 = vcmask 130048  }
  0x51   : > { %vm1374_vm3 = vmand %vm186_vm1, %vm187_vm2  ;;  %253 = vst.msk [vmem:[#allocation2 + $0x8] sm:$0xf] %vm181_vm0, %v952_v6  ;;  %v189_v21 = vld [vmem:[#allocation2 + $0x10] sm:$0x1]  ;;  %v196_v23 = vld [vmem:[#allocation2 + $0x24] sm:$0x1]  ;;  %997 = vmatprep.subr.bf16.mxu0 %v1393_v20 }
  0x52   : > { %254 = vst.msk [vmem:[#allocation2 + $0xc] sm:$0xf] %vm181_vm0, %v953_v7  ;;  %257 = vst.msk [vmem:[#allocation2 + $0x30] sm:$0xf] %vm181_vm0, %v956_v9  ;;  %v190_v22 = vsel %vm1374_vm3, 0, %v189_v21  ;;  %v197_v25 = vsel %vm1374_vm3, 0, %v196_v23 }
  0x53   : > { %258 = vst.msk [vmem:[#allocation2 + $0x34] sm:$0xf] %vm181_vm0, %v957_v10  ;;  %255 = vst.msk [vmem:[#allocation2 + $0x1c] sm:$0xf] %vm181_vm0, %v954_v14  ;;  %v203_v24 = vld [vmem:[#allocation2 + $0x38] sm:$0x1] }
  0x54   : > { %256 = vst.msk [vmem:[#allocation2 + $0x20] sm:$0xf] %vm181_vm0, %v955_v15  ;;  %259 = vst.msk [vmem:[#allocation2 + $0x44] sm:$0xf] %vm181_vm0, %v958_v18  ;;  %v204_v26 = vsel %vm1374_vm3, 0, %v203_v24  ;;  %vm784_vm10 = vcmask 523264  }
  0x55   : > { %260 = vst.msk [vmem:[#allocation2 + $0x48] sm:$0xf] %vm181_vm0, %v959_v19  ;;  %191 = vst [vmem:[#allocation2 + $0x10] sm:$0x1] %v190_v22  ;;  %v210_v27 = vld [vmem:[#allocation2 + $0x4c] sm:$0x1] }
  0x56   : > { %v261_v28 = vld [vmem:[#allocation2 + $0x4] sm:$0x8]  ;;  %198 = vst [vmem:[#allocation2 + $0x24] sm:$0x1] %v197_v25  ;;  %205 = vst [vmem:[#allocation2 + $0x38] sm:$0x1] %v204_v26 }
  0x57   : > { %v211_v29 = vsel %vm1374_vm3, 0, %v210_v27  ;;  %v276_v30 = vshrl.u32 %v261_v28, 16  ;;  %v1408_v31 = vld [vmem:[#allocation2 + $0x18] sm:$0x8]  ;;  %v1410_v32 = vld [vmem:[#allocation2 + $0x2c] sm:$0x8] }
  0x58   : > { %212 = vst [vmem:[#allocation2 + $0x4c] sm:$0x1] %v211_v29  ;;  %vm273_vm5 = vsmask.f32 4368  ;;  %v1412_v33 = vld [vmem:[#allocation2 + $0x40] sm:$0x8] }
  0x59   : > { %v1414_v34 = vrot.slane %v276_v30, 11  ;;  %v298_v35 = vshrl.u32 %v1408_v31, 16  ;;  %v320_v36 = vshrl.u32 %v1410_v32, 16  ;;  %v342_v37 = vshrl.u32 %v1412_v33, 16  ;;  %v262_v38 = vld [vmem:[#allocation2 + $0x8] sm:$0xf]  ;;  %vm1434_vm8 = vmor %vm187_vm2, %vm273_vm5 }
  0x5a   : > { %v263_v39 = vld [vmem:[#allocation2 + $0xc] sm:$0xf]  ;;  %v268_v40 = vld [vmem:[#allocation2 + $0x30] sm:$0xf]  ;;  %v281_v41 = vshrl.u32 %v262_v38, 16  ;;  %v284_v42 = vshll.u32 %v262_v38, 16 }
  0x5b   : > { %v290_v43 = vshrl.u32 %v263_v39, 16  ;;  %v293_v44 = vshll.u32 %v263_v39, 16  ;;  %v269_v45 = vld [vmem:[#allocation2 + $0x34] sm:$0xf]  ;;  %v917_v46 = vcombine.low %v262_v38, %v263_v39  ;;  %v325_v47 = vshrl.u32 %v268_v40, 16  ;;  %s1507_s15 = scalar_lea.vmem [#allocation8], %s903_s22 }
  0x5c   : > { %v328_v48 = vshll.u32 %v268_v40, 16  ;;  %v334_v49 = vshrl.u32 %v269_v45, 16  ;;  %v265_v50 = vld [vmem:[#allocation2 + $0x1c] sm:$0xf]  ;;  %v283_v51 = vrot.slane %v281_v41, 7  ;;  %v337_v53 = vshll.u32 %v269_v45, 16 }
  0x5d   : > { %v292_v52 = vrot.slane %v290_v43, 7  ;;  %v919_v54 = vcombine.low %v268_v40, %v269_v45  ;;  %v266_v55 = vld [vmem:[#allocation2 + $0x20] sm:$0xf]  ;;  %979 = vmatprep.mubr.msk.bf16.mxu0 %vm394_vm4, %v917_v46  ;;  %v1420_v56 = vrot.slane %v325_v47, 7  ;;  %v303_v58 = vshrl.u32 %v265_v50, 16  ;;  %s961_s17 = sshll.u32 %s1250_s13, 10 }
  0x5e   : > { %v336_v57 = vrot.slane %v334_v49, 7  ;;  %v306_v59 = vshll.u32 %v265_v50, 16  ;;  %v286_v60 = vor.u32 %v284_v42, %v283_v51  ;;  %v288_v61 = vrot.slane %v283_v51, 4  ;;  %v1427_v4 = vld [vmem:[#allocation2 + $0x44] sm:$0xf]  ;;  %s808_s18 = sshll.u32 %s1507_s15, 4  ;;  %s1526_s24 = scalar_lea.hbm %s1577_s2, %s961_s17  ;;  %s1528_s18 = int_to_ptr.vmem [resolvable:$true] %s808_s18 }
  0x5f   : > { %v295_v62 = vor.u32 %v293_v44, %v292_v52  ;;  %983 = vmatprep.mubr.msk.bf16.mxu1 %vm394_vm4, %v919_v54  ;;  %v312_v63 = vshrl.u32 %v266_v55, 16  ;;  %vm579_vm6 = vsmask.f32 3328  ;;  %vm580_vm7 = vsmask.f32 7440  ;;  %s794_s13 = scalar_lea.sflag [#allocation5], %s1349_s14 }
  0x60   : > { %v1424_v0 = vor.u32 %v328_v48, %v1420_v56  ;;  %v332_v1 = vrot.slane %v1420_v56, 4  ;;  %v339_v2 = vor.u32 %v337_v53, %v336_v57  ;;  %v305_v3 = vrot.slane %v303_v58, 7  ;;  %v1429_v5 = vld [vmem:[#allocation2 + $0x48] sm:$0xf]  ;;  %v568_v22 = vld [vmem:[#allocation2 + $0xc] sm:$0xf]  ;;  %vm1461_vm9 = vmor %vm579_vm6, %vm580_vm7 }
  0x61   : > { %v314_v6 = vrot.slane %v312_v63, 7  ;;  %v315_v7 = vshll.u32 %v266_v55, 16  ;;  %v918_v8 = vcombine.low %v265_v50, %v266_v55  ;;  %v347_v9 = vshrl.u32 %v1427_v4, 16  ;;  %v567_v16 = vld [vmem:[#allocation2 + $0x8] sm:$0xf]  ;;  %s1134_s25 = scalar_lea.vmem %s1528_s18, 1024 }
  0x62   : > { %v308_v12 = vor.u32 %v306_v59, %v305_v3  ;;  %v310_v13 = vrot.slane %v305_v3, 4  ;;  %v350_v14 = vshll.u32 %v1427_v4, 16  ;;  %v356_v15 = vshrl.u32 %v1429_v5, 16  ;;  %v569_v23 = vld [vmem:[#allocation2 + $0x10] sm:$0x1]  ;;  %p1135_p8 = scmp.ne.s32.totalorder %s1528_s18, %s1134_s25  ;;  %p1599_p3 = scmp.ne.s32.totalorder %s1587_s30, 0 }
  0x63   : > { %v317_v17 = vor.u32 %v315_v7, %v314_v6  ;;  %980 = vmatmul.mubr.msk.bf16.vlgmr.msra.gmra.mxu0 %vm394_vm4, %v918_v8  ;;  %v1441_v18 = vrot.slane %v347_v9, 7  ;;  %v359_v19 = vshll.u32 %v1429_v5, 16  ;;  %v920_v21 = vcombine.low %v1427_v4, %v1429_v5  ;;  %v570_v28 = vld [vmem:[#allocation2 + $0x1c] sm:$0xf]  ;;  %v571_v41 = vld [vmem:[#allocation2 + $0x20] sm:$0xf] }
  0x64   : > { %v358_v24 = vrot.slane %v356_v15, 7  ;;  %998 = vmatpush3.bf16.msra.mxu0 %v1393_v20  ;;  %v287_v25 = vsel %vm1434_vm8, %v1414_v34, %v286_v60  ;;  %v296_v26 = vsel %vm1434_vm8, %v288_v61, %v295_v62  ;;  %v914_v27 = vrot.slane %v298_v35, 11  ;;  %v572_v44 = vld [vmem:[#allocation2 + $0x24] sm:$0x1]  ;;  %v573_v6 = vld [vmem:[#allocation2 + $0x30] sm:$0xf]  ;;  %p1136_p11 = pnand %p1135_p8, %p1599_p3 }
  0x65   : > { %984 = vmatmul.mubr.msk.bf16.vlgmr.msra.gmra.mxu1 %vm394_vm4, %v920_v21  ;;  %v926_v29 = vcombine.low %v287_v25, %v296_v26  ;;  %v318_v30 = vsel %vm1434_vm8, %v310_v13, %v317_v17  ;;  %v583_v31 = vshrl.u32 %v567_v16, 16  ;;  %v586_v38 = vshll.u32 %v567_v16, 16  ;;  %v574_v9 = vld [vmem:[#allocation2 + $0x34] sm:$0xf]  ;;  %v575_v21 = vld [vmem:[#allocation2 + $0x38] sm:$0x1] }
  0x66   : > { %988 = vmatpush3.bf16.msra.mxu1 %v1382_v11  ;;  %v309_v20 = vsel %vm1434_vm8, %v914_v27, %v308_v12  ;;  %v592_v39 = vshll.u32 %v568_v22, 16  ;;  %v596_v34 = vshrl.u32 %v568_v22, 16  ;;  %v602_v40 = vshll.u32 %v569_v23, 16  ;;  %v576_v25 = vld [vmem:[#allocation2 + $0x44] sm:$0xf]  ;;  %p1137_p12 = pneg %p1136_p11  ;;  %s1211_s26 = smov [#allocation8]  }
  0x67   : > { %989 = vmatprep.mubr.msk.bf16.mxu1 %vm394_vm4, %v926_v29  ;;  %v927_v35 = vcombine.low %v309_v20, %v318_v30  ;;  %v585_v42 = vrot.slane %v583_v31, 4  ;;  %v588_v43 = vrot.slane %v586_v38, 5  ;;  %v607_v45 = vshrl.u32 %v570_v28, 16  ;;  %v578_v26 = vld [vmem:[#allocation2 + $0x4c] sm:$0x1]  ;;  %s1138_s27 = sshll.u32 %s1211_s26, 4  ;;  %s1139_s27 = int_to_ptr.vmem [resolvable:$false] %s1138_s27 }
  0x68   : > { %v594_v46 = vrot.slane %v592_v39, 5  ;;  %v598_v47 = vrot.slane %v596_v34, 4  ;;  %v604_v48 = vrot.slane %v602_v40, 5  ;;  %v610_v49 = vshll.u32 %v570_v28, 16  ;;  %s1140_s28 = scalar_lea.vmem %s1139_s27, 2048  ;;  %p1141_p10 = scmp.lt.s32.totalorder %s1528_s18, %s1139_s27 }
  0x69   : > { %v589_v50 = vor.u32 %v588_v43, %v585_v42  ;;  %v609_v11 = vrot.slane %v607_v45, 4  ;;  %v616_v51 = vshll.u32 %v571_v41, 16  ;;  %v620_v52 = vshrl.u32 %v571_v41, 16  ;;  %p1142_p2 = scmp.lt.s32.totalorder %s1140_s28, %s1134_s25 }
  0x6a   : > { %v599_v54 = vor.u32 %v598_v47, %v594_v46  ;;  %v612_v55 = vrot.slane %v610_v49, 5  ;;  %v626_v56 = vshll.u32 %v572_v44, 16  ;;  %v915_v57 = vrot.slane %v320_v36, 11 }
  0x6b   : > { %v590_v58 = vrot.slane %v589_v50, 4  ;;  %v618_v59 = vrot.slane %v616_v51, 5  ;;  %v622_v60 = vrot.slane %v620_v52, 4  ;;  %v340_v61 = vsel %vm1434_vm8, %v332_v1, %v339_v2  ;;  %p1143_p13 = por %p1142_p2, %p1141_p10 }
  0x6c   : > { %v600_v62 = vrot.slane %v599_v54, 4  ;;  %v613_v63 = vor.u32 %v612_v55, %v609_v11  ;;  %v628_v3 = vrot.slane %v626_v56, 5  ;;  %v331_v5 = vsel %vm1434_vm8, %v915_v57, %v1424_v0 }
  0x6d   : > { %990 = vmatmul.mubr.msk.bf16.vlgmr.msra.gmra.mxu1 %vm394_vm4, %v927_v35  ;;  %v595_v32 = vsel %vm1461_vm9, %v590_v58, %v594_v46  ;;  %v623_v36 = vor.u32 %v622_v60, %v618_v59  ;;  %v928_v7 = vcombine.low %v331_v5, %v340_v61  ;;  %v916_v8 = vrot.slane %v342_v37, 11  ;;  %p1144_p0 = pnand %p1143_p13, %p1137_p12 }
  0x6e   : > { %v605_v1 = vsel %vm1461_vm9, %v600_v62, %v604_v48  ;;  %v614_v2 = vrot.slane %v613_v63, 4  ;;  %v352_v0 = vor.u32 %v350_v14, %v1441_v18  ;;  %v354_v12 = vrot.slane %v1441_v18, 4 }
  0x6f   : > { %v935_v13 = vcombine.low %v595_v32, %v605_v1  ;;  %v624_v15 = vrot.slane %v623_v36, 4  ;;  %993 = vmatprep.mubr.msk.bf16.mxu1 %vm394_vm4, %v928_v7  ;;  %v361_v16 = vor.u32 %v359_v19, %v358_v24  ;;  %v631_v17 = vshrl.u32 %v573_v6, 16  ;;  %v577_v24 = vld [vmem:[#allocation2 + $0x48] sm:$0xf] }
  0x70   : > { %v619_v33 = vsel %vm1461_vm9, %v614_v2, %v618_v59  ;;  %v353_v37 = vsel %vm1434_vm8, %v916_v8, %v352_v0  ;;  %v634_v22 = vshll.u32 %v573_v6, 16  ;;  %v640_v23 = vshll.u32 %v574_v9, 16 }
  0x71   : > { %999 = vmatprep.mubr.msk.bf16.mxu0 %vm394_vm4, %v935_v13  ;;  %v629_v4 = vsel %vm1461_vm9, %v624_v15, %v628_v3  ;;  %v362_v14 = vsel %vm1434_vm8, %v354_v12, %v361_v16  ;;  %v633_v18 = vrot.slane %v631_v17, 4  ;;  %v644_v19 = vshrl.u32 %v574_v9, 16 }
  0x72   : > { %v936_v27 = vcombine.low %v619_v33, %v629_v4  ;;  %v929_v28 = vcombine.low %v353_v37, %v362_v14  ;;  %v636_v29 = vrot.slane %v634_v22, 5  ;;  %v642_v30 = vrot.slane %v640_v23, 5 }
  0x73   : > { %v646_v31 = vrot.slane %v644_v19, 4  ;;  %v650_v38 = vshll.u32 %v575_v21, 16  ;;  %v655_v20 = vshrl.u32 %v576_v25, 16  ;;  %v658_v39 = vshll.u32 %v576_v25, 16 }
  0x74   : > { %1000 = vmatmul.mubr.msk.bf16.vlgmr.msra.gmra.mxu0 %vm394_vm4, %v936_v27  ;;  %v637_v34 = vor.u32 %v636_v29, %v633_v18  ;;  %v664_v40 = vshll.u32 %v577_v24, 16  ;;  %v668_v41 = vshrl.u32 %v577_v24, 16  ;;  %v674_v35 = vshll.u32 %v578_v26, 16 }
  0x75   : > { %994 = vmatmul.mubr.msk.bf16.gmra.mxu1 %vm394_vm4, %v929_v28  ;;  %v647_v10 = vor.u32 %v646_v31, %v642_v30  ;;  %v652_v42 = vrot.slane %v650_v38, 5  ;;  %v657_v43 = vrot.slane %v655_v20, 4  ;;  %v660_v44 = vrot.slane %v658_v39, 5 }
  0x76   : > { %v638_v45 = vrot.slane %v637_v34, 4  ;;  %v666_v46 = vrot.slane %v664_v40, 5  ;;  %v670_v47 = vrot.slane %v668_v41, 4  ;;  %v676_v51 = vrot.slane %v674_v35, 5 }
  0x77   : > { %v648_v48 = vrot.slane %v647_v10, 4  ;;  %v661_v49 = vor.u32 %v660_v44, %v657_v43 }
  0x78   : > { %v643_v50 = vsel %vm1461_vm9, %v638_v45, %v642_v30  ;;  %v671_v11 = vor.u32 %v670_v47, %v666_v46 }
  0x79   : > { %v653_v52 = vsel %vm1461_vm9, %v648_v48, %v652_v42  ;;  %v662_v54 = vrot.slane %v661_v49, 4 }
  0x7a   : > { %v937_v55 = vcombine.low %v643_v50, %v653_v52  ;;  %v672_v56 = vrot.slane %v671_v11, 4 }
  0x7b   : > { %v667_v57 = vsel %vm1461_vm9, %v662_v54, %v666_v46 }
  0x7c   : > { %1003 = vmatprep.mubr.msk.bf16.mxu0 %vm394_vm4, %v937_v55  ;;  %v677_v58 = vsel %vm1461_vm9, %v672_v56, %v676_v51 }
  0x7d   : > { %v938_v59 = vcombine.low %v667_v57, %v677_v58 }
  0x7f   : > { %1004 = vmatmul.mubr.msk.bf16.gmra.mxu0 %vm394_vm4, %v938_v59 }
 0x123   : > { %v981_v60 = vpop.f32.mrf.mxu0 }
 0x125   : > { %v985_v61 = vpop.f32.mrf.mxu1  ;;  %v441_v63 = vpop.f32.mrf.mxu0 }
 0x127   : > { %v457_v62 = vpop.f32.mrf.mxu1  ;;  %v982_v6 = vpop.f32.mrf.mxu0 }
 0x129   : > { %v986_v3 = vpop.f32.mrf.mxu1  ;;  %v444_v7 = vpop.f32.mrf.mxu0 }
 0x12b   : > { %v460_v5 = vpop.f32.mrf.mxu1 }
 0x12d   : > { %v991_v32 = vpop.f32.mrf.mxu1 }
 0x12e   : > { %v545_v8 = vadd.f32 %v991_v32, %v981_v60 }
 0x12f   : > { %v536_v36 = vpop.f32.mrf.mxu1 }
 0x130   : > { %v537_v1 = vadd.f32 %v536_v36, %v441_v63 }
 0x131   : > { %v992_v9 = vpop.f32.mrf.mxu1 }
 0x132   : > { %v548_v12 = vadd.f32 %v992_v9, %v982_v6 }
 0x133   : > { %v539_v2 = vpop.f32.mrf.mxu1 }
 0x134   : > { %v1001_v53 = vpop.f32.mrf.mxu0  ;;  %v540_v17 = vadd.f32 %v539_v2, %v444_v7 }
 0x135   : > { %v778_v0 = vadd.f32 %v1001_v53, %v545_v8  ;;  %v995_v13 = vpop.f32.mrf.mxu1 }
 0x136   : > { %v745_v15 = vpop.f32.mrf.mxu0  ;;  %v561_v4 = vadd.f32 %v995_v13, %v985_v61 }
 0x137   : > { %787 = vst.msk [vmem:[%s1507_s15 + $0x10] sm:$0xff] %vm784_vm10, %v778_v0  ;;  %v776_v16 = vadd.f32 %v745_v15, %v537_v1  ;;  %v552_v33 = vpop.f32.mrf.mxu1 }
 0x138   : > { %v1002_v37 = vpop.f32.mrf.mxu0  ;;  %v553_v14 = vadd.f32 %v552_v33, %v457_v62 }
 0x139   : > { %785 = vst.msk [vmem:[%s1507_s15] sm:$0xff] %vm784_vm10, %v776_v16  ;;  %v779_v21 = vadd.f32 %v1002_v37, %v548_v12  ;;  %v996_v25 = vpop.f32.mrf.mxu1 }
 0x13a   : > { %v748_v22 = vpop.f32.mrf.mxu0  ;;  %v564_v26 = vadd.f32 %v996_v25, %v986_v3 }
 0x13b   : > { %788 = vst.msk [vmem:[%s1507_s15 + $0x18] sm:$0xff] %vm784_vm10, %v779_v21  ;;  %v777_v23 = vadd.f32 %v748_v22, %v540_v17  ;;  %v555_v19 = vpop.f32.mrf.mxu1 }
 0x13c   : > { %v556_v29 = vadd.f32 %v555_v19, %v460_v5 }
 0x13d   : > { %786 = vst.msk [vmem:[%s1507_s15 + $0x8] sm:$0xff] %vm784_vm10, %v777_v23 }
 0x13f   : > { %v1005_v18 = vpop.f32.mrf.mxu0 }
 0x140   : > { %v782_v24 = vadd.f32 %v1005_v18, %v561_v4 }
 0x141   : > { %v761_v27 = vpop.f32.mrf.mxu0 }
 0x142   : > { %791 = vst.msk [vmem:[%s1507_s15 + $0x30] sm:$0xff] %vm784_vm10, %v782_v24  ;;  %v780_v28 = vadd.f32 %v761_v27, %v553_v14 }
 0x143   : > { %v1006_v30 = vpop.f32.mrf.mxu0 }
 0x144   : > { %789 = vst.msk [vmem:[%s1507_s15 + $0x20] sm:$0xff] %vm784_vm10, %v780_v28  ;;  %v783_v31 = vadd.f32 %v1006_v30, %v564_v26 }
 0x145   : > { %v764_v38 = vpop.f32.mrf.mxu0 }
 0x146   : > { %792 = vst.msk [vmem:[%s1507_s15 + $0x38] sm:$0xff] %vm784_vm10, %v783_v31  ;;  %v781_v20 = vadd.f32 %v764_v38, %v556_v29 }
 0x148   : > { %790 = vst.msk [vmem:[%s1507_s15 + $0x28] sm:$0xff] %vm784_vm10, %v781_v20 }
 0x149   : > { %1147 = shalt.err (!%p1144_p0)
}
 0x14a   : > { %s1148_s3 = scalar_lea.hbm %s1526_s24, 1024  ;;  %s1152_s6 = scalar_lea.hbm %s1577_s2, 2048 }
 0x14b   : > { %p1149_p5 = scmp.ne.s32.totalorder %s1526_s24, %s1148_s3  ;;  %p1153_p6 = scmp.lt.s32.totalorder %s1526_s24, %s1577_s2 }
 0x14c   : > { %p1154_p7 = scmp.lt.s32.totalorder %s1152_s6, %s1148_s3 }
 0x14d   : > { %p1150_p9 = pnand %p1149_p5, %p1599_p3 }
 0x14e   : > { %p1155_p4 = por %p1154_p7, %p1153_p6 }
 0x14f   : > { %p1151_p1 = pneg %p1150_p9 }
 0x151   : > { %p1156_p8 = pnand %p1155_p4, %p1151_p1 }
 0x153   : > { %1159 = shalt.err (!%p1156_p8)
}
 0x154   : > { %s1212_s23 = smov 128   ;;  %s1213_s8 = smov 8  }
 0x155   : > { %1015 = dma.vmem_to_hbm [thread:$0]  (%p1599_p3), %s1528_s18, 1024, %s1526_s24, %s794_s13, %s1212_s23, %s1212_s23, %s1213_s8  }
 0x156 PF: > { %s823_s15 = sand.u32 1, %s1190_s9   ;;  %p1600_p11 = scmp.ne.s32.totalorder %s1583_s16, 0 }
 0x157   : > { %p1601_p12 = scmp.ge.s32.totalorder %s1202_s12, 2  ;;  %s824_s17 = scalar_lea.sflag [#allocation5], %s823_s15 }
 0x159   : > { %p1026_p10 = pnand %p1601_p12, %p1600_p11 }
 0x15b   : > { %p1027_p2 = pneg %p1026_p10 }
 0x15d   : > { %1185 = dma.done.wait (%p1027_p2), %s824_s17, 1024  }
 0x15e   : > { %1187 = vsyncadd (%p1027_p2), %s824_s17, 4294966272  ;;  %p16_p13 = scmp.ge.s32.totalorder %s1283_s21, 4   ;;  %s1602_s9 = smov %s1194_s10 }
 0x15f   : > { %s1603_s10 = smov %s1198_s11  ;;  %s1604_s11 = smov %s1300_s29 }
 0x160   : > { %s1605_s12 = smov %s1283_s21  ;;  %18 = sbr.rel (!%p16_p13) target bundleno = 6 (0x6), region = 80 }
 0x165   :  { %829 = vsyncpa [#allocation4], 1 }
 0x166   :  { %831 = vsyncpa [#allocation4 + $0x1], 1 }
 0x167   :  { %832 = vsyncpa [#allocation7], 1 }
 0x168   :  { %834 = vsyncpa [#allocation7 + $0x1], 1 }
 0x169   :  { %835 = vsyncpa [#allocation5], 1 }
 0x16a   :  { %837 = vsyncpa [#allocation5 + $0x1], 1 }

</bundles_post_ra>
